<compile_context>
chip_gen: v7x
topology: tpu7x:2x2x1
jax: 0.10.0
libtpu: 0.0.40
codegen_flags: <defaults>
</compile_context>

<pallas_src>
import functools

import jax
import jax.numpy as jnp
import numpy as np
from jax.experimental import pallas as pl
from jax.experimental.pallas import tpu as pltpu


def _round_up(x, m):
    return ((x + m - 1) // m) * m


def _encoder_kernel(n_mid, non_linear, first_is_head, *refs):
    """Full encoder forward for one batch tile.

    refs = (x, c, w_x, w_c, b_first,
            [w_mid, b_mid]   if n_mid > 0,
            [w_head, b_head] if not first_is_head,
            out)
    x      : (TB, in_pad)   bf16
    c      : (TB, c_pad)    bf16
    w_*    : bf16 weight slabs (resident in VMEM)
    b_*    : f32  bias slabs  (resident in VMEM)
    out    : (TB, F_out)    f32 lane-dense [mu | logvar | 0...] slab
    """
    x_ref, c_ref, wx_ref, wc_ref, bf_ref = refs[:5]
    rest = list(refs[5:])
    if n_mid > 0:
        wm_ref, bm_ref = rest[0], rest[1]
        rest = rest[2:]
    if not first_is_head:
        hw_ref, hb_ref = rest[0], rest[1]
        rest = rest[2:]
    out_ref = rest[0]

    # Layer 0 (or the fused head if there are no encoder layers): split matmul
    # over x and c instead of materialising concat(x, c). f32 accumulation.
    acc = (
        jnp.dot(x_ref[...], wx_ref[...], preferred_element_type=jnp.float32)
        + jnp.dot(c_ref[...], wc_ref[...], preferred_element_type=jnp.float32)
        + bf_ref[...]
    )
    if first_is_head:
        out_ref[...] = acc
        return
    if non_linear:
        acc = jnp.maximum(acc, 0.0)
    h = acc.astype(jnp.bfloat16)

    # Remaining encoder layers (weights stacked in one resident slab).
    for i in range(n_mid):
        acc = jnp.dot(h, wm_ref[i], preferred_element_type=jnp.float32) + bm_ref[i]
        if non_linear:
            acc = jnp.maximum(acc, 0.0)
        h = acc.astype(jnp.bfloat16)

    # Fused [mu | logvar] head: one matmul, one lane-dense store.
    out_ref[...] = (
        jnp.dot(h, hw_ref[...], preferred_element_type=jnp.float32) + hb_ref[...]
    )


def init_encoder_params(key, input_dim, hidden_dims, c_dim):
    """Deterministic synthetic parameters matching nn.Linear shapes.

    Weights stored (in_features, out_features); biases as (1, out_features).
    """
    layer_sizes = [input_dim + c_dim] + list(hidden_dims)
    params = {"enc": [], "mu": None, "logvar": None}
    keys = jax.random.split(key, len(layer_sizes) + 1)

    # encoder_layers = all linears except the last one in the chain
    for i, (d0, d1) in enumerate(zip(layer_sizes[:-2], layer_sizes[1:-1])):
        w = jax.random.normal(keys[i], (d0, d1), jnp.float32) * 0.1
        b = jax.random.normal(jax.random.fold_in(keys[i], 1), (1, d1), jnp.float32) * 0.1
        params["enc"].append((w, b))

    d_in, d_out = layer_sizes[-2], layer_sizes[-1]
    wm = jax.random.normal(keys[-2], (d_in, d_out), jnp.float32) * 0.1
    bm = jax.random.normal(jax.random.fold_in(keys[-2], 1), (1, d_out), jnp.float32) * 0.1
    wl = jax.random.normal(keys[-1], (d_in, d_out), jnp.float32) * 0.1
    bl = jax.random.normal(jax.random.fold_in(keys[-1], 1), (1, d_out), jnp.float32) * 0.1
    params["mu"] = (wm, bm)
    params["logvar"] = (wl, bl)
    return params


def pack_encoder_params(params, input_dim, c_dim):
    """One-time host-side packing into lane-dense, bf16 weight slabs.

    Returns (packed_arrays_dict, static_meta_dict).
    """
    enc = params["enc"]
    wm, bm = params["mu"]
    wl, bl = params["logvar"]
    n_enc = len(enc)
    z_dim = int(wm.shape[1])

    f_out = max(128, _round_up(2 * z_dim, 128))
    feat = (max(128, _round_up(max(int(w.shape[1]) for w, _ in enc), 128))
            if n_enc >= 1 else f_out)
    width_first = feat if n_enc >= 1 else f_out
    in_pad = _round_up(max(input_dim, 1), 8)
    c_pad = _round_up(max(c_dim, 1), 8)

    # Fused [mu | logvar] head.
    w_head_full = np.concatenate(
        [np.asarray(wm, np.float32), np.asarray(wl, np.float32)], axis=1)
    b_head_full = np.concatenate(
        [np.asarray(bm, np.float32).reshape(1, -1),
         np.asarray(bl, np.float32).reshape(1, -1)], axis=1)

    # First layer in the chain (enc[0], or the fused head if no enc layers).
    if n_enc >= 1:
        w0, b0 = enc[0]
        w0 = np.asarray(w0, np.float32)
        b0 = np.asarray(b0, np.float32).reshape(1, -1)
    else:
        w0, b0 = w_head_full, b_head_full

    d1 = w0.shape[1]
    wx = np.zeros((in_pad, width_first), np.float32)
    wc = np.zeros((c_pad, width_first), np.float32)
    bf = np.zeros((1, width_first), np.float32)
    wx[:input_dim, :d1] = w0[:input_dim]
    wc[:c_dim, :d1] = w0[input_dim:input_dim + c_dim]
    bf[:, :d1] = b0

    packed = {
        "wx": jnp.asarray(wx, jnp.bfloat16),
        "wc": jnp.asarray(wc, jnp.bfloat16),
        "bf": jnp.asarray(bf, jnp.float32),
        "w_mid": None, "b_mid": None, "w_head": None, "b_head": None,
    }
    meta = dict(
        input_dim=input_dim, c_dim=c_dim, in_pad=in_pad, c_pad=c_pad,
        n_mid=max(n_enc - 1, 0), feat=feat, f_out=f_out,
        width_first=width_first, z_dim=z_dim, first_is_head=(n_enc == 0),
    )

    if n_enc >= 2:
        n_mid = n_enc - 1
        wm_stack = np.zeros((n_mid, feat, feat), np.float32)
        bm_stack = np.zeros((n_mid, 1, feat), np.float32)
        for i, (w, b) in enumerate(enc[1:]):
            w = np.asarray(w, np.float32)
            b = np.asarray(b, np.float32).reshape(1, -1)
            wm_stack[i, :w.shape[0], :w.shape[1]] = w
            bm_stack[i, :, :b.shape[1]] = b
        packed["w_mid"] = jnp.asarray(wm_stack, jnp.bfloat16)
        packed["b_mid"] = jnp.asarray(bm_stack, jnp.float32)

    if n_enc >= 1:
        whp = np.zeros((feat, f_out), np.float32)
        bhp = np.zeros((1, f_out), np.float32)
        whp[:w_head_full.shape[0], :w_head_full.shape[1]] = w_head_full
        bhp[:, :b_head_full.shape[1]] = b_head_full
        packed["w_head"] = jnp.asarray(whp, jnp.bfloat16)
        packed["b_head"] = jnp.asarray(bhp, jnp.float32)

    return packed, meta


@functools.partial(
    jax.jit,
    static_argnames=("input_dim", "c_dim", "in_pad", "c_pad", "n_mid", "feat",
                     "f_out", "width_first", "z_dim", "first_is_head",
                     "non_linear"))
def _encoder_forward_impl(x, c, wx, wc, bf, w_mid, b_mid, w_head, b_head, *,
                          input_dim, c_dim, in_pad, c_pad, n_mid, feat, f_out,
                          width_first, z_dim, first_is_head, non_linear):
    c = c.reshape(-1, c_dim)          # matches torch's c.reshape(-1, c_dim)
    B = x.shape[0]

    # Batch tiling: >= 2 grid steps for B >= 16 (feeds both v7x TensorCores),
    # tile capped at 256 rows to bound the live vreg set; rows padded to B_pad.
    B8 = _round_up(max(B, 1), 8)
    if B8 >= 16:
        TB = min(256, _round_up(B8, 16) // 2)
    else:
        TB = B8
    B_pad = _round_up(B8, TB)

    # bf16 inputs: half the streamed HBM traffic. Only rows (and tiny sublane
    # column pads) are padded — no (B, F)-wide zero slab is ever materialised.
    xb = x.astype(jnp.bfloat16)
    cb = c.astype(jnp.bfloat16)
    if (B_pad != B) or (in_pad != input_dim):
        xb = jnp.pad(xb, ((0, B_pad - B), (0, in_pad - input_dim)))
    if (B_pad != B) or (c_pad != c_dim):
        cb = jnp.pad(cb, ((0, B_pad - B), (0, c_pad - c_dim)))

    row = lambda i: (i, 0)
    k2 = lambda i: (0, 0)
    k3 = lambda i: (0, 0, 0)
    resident = dict(pipeline_mode=pl.Buffered(1))   # invariant: single-buffered

    in_specs = [
        pl.BlockSpec((TB, in_pad), row),                         # x: tiled
        pl.BlockSpec((TB, c_pad), row),                          # c: tiled
        pl.BlockSpec((in_pad, width_first), k2, **resident),     # W_x (layer 0)
        pl.BlockSpec((c_pad, width_first), k2, **resident),      # W_c (layer 0)
        pl.BlockSpec((1, width_first), k2, **resident),          # b   (layer 0)
    ]
    operands = [xb, cb, wx, wc, bf]
    if n_mid > 0:
        in_specs += [pl.BlockSpec((n_mid, feat, feat), k3, **resident),
                     pl.BlockSpec((n_mid, 1, feat), k3, **resident)]
        operands += [w_mid, b_mid]
    if not first_is_head:
        in_specs += [pl.BlockSpec((feat, f_out), k2, **resident),
                     pl.BlockSpec((1, f_out), k2, **resident)]
        operands += [w_head, b_head]

    # VMEM budget: resident slabs (single-buffered) + streamed activation
    # double-buffers + headroom for live intermediates; never below the 32 MiB
    # default, capped at 64 MiB (v7x physical VMEM per TensorCore).
    resident_bytes = (in_pad + c_pad) * width_first * 2 + width_first * 4
    if n_mid > 0:
        resident_bytes += n_mid * feat * (feat * 2 + 4)
    if not first_is_head:
        resident_bytes += feat * f_out * 2 + f_out * 4
    stream_bytes = 2 * TB * (in_pad + c_pad) * 2 + 2 * TB * f_out * 4
    live_bytes = 6 * TB * max(feat, f_out) * 4
    vmem_limit = int(min(
        max(int((resident_bytes + stream_bytes + live_bytes) * 1.5), 32 << 20),
        64 << 20))

    kernel = functools.partial(_encoder_kernel, n_mid, non_linear, first_is_head)

    out = pl.pallas_call(
        kernel,
        out_shape=jax.ShapeDtypeStruct((B_pad, f_out), jnp.float32),
        grid=(B_pad // TB,),
        in_specs=in_specs,
        out_specs=pl.BlockSpec((TB, f_out), row),
        compiler_params=pltpu.CompilerParams(
            dimension_semantics=("parallel",),
            vmem_limit_bytes=vmem_limit,
        ),
    )(*operands)

    mu = out[:B, :z_dim]
    logvar = out[:B, z_dim:2 * z_dim]
    return mu, logvar


def encoder_forward(x, c, packed, meta, *, non_linear=False):
    """Pallas-backed equivalent of Encoder.forward(x, c) -> (mu, logvar)."""
    return _encoder_forward_impl(
        x, c, packed["wx"], packed["wc"], packed["bf"],
        packed["w_mid"], packed["b_mid"], packed["w_head"], packed["b_head"],
        non_linear=non_linear, **meta)


def encoder_forward_ref(x, c, params, c_dim, non_linear=False):
    """Pure-JAX f32 reference for correctness checking."""
    c = c.reshape(-1, c_dim)
    h = jnp.concatenate([x, c], axis=1)
    for w, b in params["enc"]:
        h = h @ w + b
        if non_linear:
            h = jnp.maximum(h, 0.0)
    wm, bm = params["mu"]
    wl, bl = params["logvar"]
    return h @ wm + bm, h @ wl + bl


if __name__ == "__main__":
    # Small shapes consistent with the module's dense-MLP forward.
    B = 8
    input_dim = 16
    c_dim = 4
    hidden_dims = [32, 16, 8]   # encoder_layers: 20->32, 32->16 ; heads: 16->8
    non_linear = True

    key = jax.random.PRNGKey(0)
    kx, kc, kp = jax.random.split(key, 3)
    x = jax.random.normal(kx, (B, input_dim), jnp.float32)
    c = jax.random.normal(kc, (B, c_dim), jnp.float32)

    params = init_encoder_params(kp, input_dim, hidden_dims, c_dim)
    packed, meta = pack_encoder_params(params, input_dim, c_dim)  # packed once

    mu, logvar = encoder_forward(x, c, packed, meta, non_linear=non_linear)
    jax.block_until_ready((mu, logvar))

    mu_ref, lv_ref = encoder_forward_ref(x, c, params, c_dim, non_linear)
    assert mu.shape == (B, hidden_dims[-1]) and logvar.shape == (B, hidden_dims[-1])
    # bf16 matmul operands vs f32 reference -> loosened tolerance.
    np.testing.assert_allclose(np.asarray(mu), np.asarray(mu_ref), rtol=2e-2, atol=2e-2)
    np.testing.assert_allclose(np.asarray(logvar), np.asarray(lv_ref), rtol=2e-2, atol=2e-2)

    # Second check: batch large enough to exercise >1 grid step + row padding.
    B2 = 40
    x2 = jax.random.normal(jax.random.fold_in(kx, 1), (B2, input_dim), jnp.float32)
    c2 = jax.random.normal(jax.random.fold_in(kc, 1), (B2, c_dim), jnp.float32)
    mu2, lv2 = encoder_forward(x2, c2, packed, meta, non_linear=non_linear)
    jax.block_until_ready((mu2, lv2))
    mu2_ref, lv2_ref = encoder_forward_ref(x2, c2, params, c_dim, non_linear)
    np.testing.assert_allclose(np.asarray(mu2), np.asarray(mu2_ref), rtol=2e-2, atol=2e-2)
    np.testing.assert_allclose(np.asarray(lv2), np.asarray(lv2_ref), rtol=2e-2, atol=2e-2)

    print("KERNEL_OK")
</pallas_src>

<mosaic_0001>
module attributes {stable_mosaic.version = 11 : i64} {
  func.func @_encoder_kernel(%arg0: i32, %arg1: memref<8x16xbf16, #tpu.memory_space<vmem>>, %arg2: memref<8x8xbf16, #tpu.memory_space<vmem>>, %arg3: memref<16x128xbf16, #tpu.memory_space<vmem>>, %arg4: memref<8x128xbf16, #tpu.memory_space<vmem>>, %arg5: memref<1x128xf32, #tpu.memory_space<vmem>>, %arg6: memref<1x128x128xbf16, #tpu.memory_space<vmem>>, %arg7: memref<1x1x128xf32, #tpu.memory_space<vmem>>, %arg8: memref<128x128xbf16, #tpu.memory_space<vmem>>, %arg9: memref<1x128xf32, #tpu.memory_space<vmem>>, %arg10: memref<8x128xf32, #tpu.memory_space<vmem>>) attributes {dimension_semantics = [#tpu.dimension_semantics<parallel>], iteration_bounds = array<i64: 1>, scalar_prefetch = 0 : i64, scratch_operands = 0 : i64, tpu.core_type = #tpu.core_type<tc>, window_params = [{transform_indices = @transform_0, window_bounds = array<i64: 8, 16>}, {transform_indices = @transform_1, window_bounds = array<i64: 8, 8>}, {pipeline_mode = #tpu.pipeline_mode<synchronous>, transform_indices = @transform_2, window_bounds = array<i64: 16, 128>}, {pipeline_mode = #tpu.pipeline_mode<synchronous>, transform_indices = @transform_3, window_bounds = array<i64: 8, 128>}, {pipeline_mode = #tpu.pipeline_mode<synchronous>, transform_indices = @transform_4, window_bounds = array<i64: 1, 128>}, {pipeline_mode = #tpu.pipeline_mode<synchronous>, transform_indices = @transform_5, window_bounds = array<i64: 1, 128, 128>}, {pipeline_mode = #tpu.pipeline_mode<synchronous>, transform_indices = @transform_6, window_bounds = array<i64: 1, 1, 128>}, {pipeline_mode = #tpu.pipeline_mode<synchronous>, transform_indices = @transform_7, window_bounds = array<i64: 128, 128>}, {pipeline_mode = #tpu.pipeline_mode<synchronous>, transform_indices = @transform_8, window_bounds = array<i64: 1, 128>}, {transform_indices = @transform_9, window_bounds = array<i64: 8, 128>}]} {
    %c0 = arith.constant 0 : index
    %c0_0 = arith.constant 0 : index
    %0 = vector.load %arg1[%c0, %c0_0] : memref<8x16xbf16, #tpu.memory_space<vmem>>, vector<8x16xbf16>
    %c0_1 = arith.constant 0 : index
    %c0_2 = arith.constant 0 : index
    %1 = vector.load %arg3[%c0_1, %c0_2] : memref<16x128xbf16, #tpu.memory_space<vmem>>, vector<16x128xbf16>
    %cst = arith.constant dense<0.000000e+00> : vector<8x128xf32>
    %2 = tpu.matmul %0, %1, %cst {dimension_numbers = #tpu.dot_dimension_numbers<[1], [0], [0], [1], [0, 0, 1, 1], [], []>} : vector<8x16xbf16>, vector<16x128xbf16>, vector<8x128xf32> -> vector<8x128xf32>
    %c0_3 = arith.constant 0 : index
    %c0_4 = arith.constant 0 : index
    %3 = vector.load %arg2[%c0_3, %c0_4] : memref<8x8xbf16, #tpu.memory_space<vmem>>, vector<8x8xbf16>
    %c0_5 = arith.constant 0 : index
    %c0_6 = arith.constant 0 : index
    %4 = vector.load %arg4[%c0_5, %c0_6] : memref<8x128xbf16, #tpu.memory_space<vmem>>, vector<8x128xbf16>
    %cst_7 = arith.constant dense<0.000000e+00> : vector<8x128xf32>
    %5 = tpu.matmul %3, %4, %cst_7 {dimension_numbers = #tpu.dot_dimension_numbers<[1], [0], [0], [1], [0, 0, 1, 1], [], []>} : vector<8x8xbf16>, vector<8x128xbf16>, vector<8x128xf32> -> vector<8x128xf32>
    %6 = arith.addf %2, %5 : vector<8x128xf32>
    %c0_8 = arith.constant 0 : index
    %c0_9 = arith.constant 0 : index
    %7 = vector.load %arg5[%c0_8, %c0_9] : memref<1x128xf32, #tpu.memory_space<vmem>>, vector<1x128xf32>
    %8 = vector.broadcast %7 : vector<1x128xf32> to vector<8x128xf32>
    %9 = arith.addf %6, %8 : vector<8x128xf32>
    %cst_10 = arith.constant 0.000000e+00 : f32
    %10 = vector.broadcast %cst_10 : f32 to vector<8x128xf32>
    %11 = arith.maximumf %9, %10 : vector<8x128xf32>
    %12 = arith.truncf %11 : vector<8x128xf32> to vector<8x128xbf16>
    %c0_11 = arith.constant 0 : index
    %c0_12 = arith.constant 0 : index
    %c0_13 = arith.constant 0 : index
    %13 = vector.load %arg6[%c0_11, %c0_12, %c0_13] : memref<1x128x128xbf16, #tpu.memory_space<vmem>>, vector<1x128x128xbf16>
    %14 = vector.shape_cast %13 : vector<1x128x128xbf16> to vector<128x128xbf16>
    %cst_14 = arith.constant dense<0.000000e+00> : vector<8x128xf32>
    %15 = tpu.matmul %12, %14, %cst_14 {dimension_numbers = #tpu.dot_dimension_numbers<[1], [0], [0], [1], [0, 0, 1, 1], [], []>} : vector<8x128xbf16>, vector<128x128xbf16>, vector<8x128xf32> -> vector<8x128xf32>
    %c0_15 = arith.constant 0 : index
    %c0_16 = arith.constant 0 : index
    %c0_17 = arith.constant 0 : index
    %16 = vector.load %arg7[%c0_15, %c0_16, %c0_17] : memref<1x1x128xf32, #tpu.memory_space<vmem>>, vector<1x1x128xf32>
    %17 = vector.shape_cast %16 : vector<1x1x128xf32> to vector<1x128xf32>
    %18 = vector.broadcast %17 : vector<1x128xf32> to vector<8x128xf32>
    %19 = arith.addf %15, %18 : vector<8x128xf32>
    %cst_18 = arith.constant 0.000000e+00 : f32
    %20 = vector.broadcast %cst_18 : f32 to vector<8x128xf32>
    %21 = arith.maximumf %19, %20 : vector<8x128xf32>
    %22 = arith.truncf %21 : vector<8x128xf32> to vector<8x128xbf16>
    %c0_19 = arith.constant 0 : index
    %c0_20 = arith.constant 0 : index
    %23 = vector.load %arg8[%c0_19, %c0_20] : memref<128x128xbf16, #tpu.memory_space<vmem>>, vector<128x128xbf16>
    %cst_21 = arith.constant dense<0.000000e+00> : vector<8x128xf32>
    %24 = tpu.matmul %22, %23, %cst_21 {dimension_numbers = #tpu.dot_dimension_numbers<[1], [0], [0], [1], [0, 0, 1, 1], [], []>} : vector<8x128xbf16>, vector<128x128xbf16>, vector<8x128xf32> -> vector<8x128xf32>
    %c0_22 = arith.constant 0 : index
    %c0_23 = arith.constant 0 : index
    %25 = vector.load %arg9[%c0_22, %c0_23] : memref<1x128xf32, #tpu.memory_space<vmem>>, vector<1x128xf32>
    %26 = vector.broadcast %25 : vector<1x128xf32> to vector<8x128xf32>
    %27 = arith.addf %24, %26 : vector<8x128xf32>
    %c0_24 = arith.constant 0 : index
    %c0_25 = arith.constant 0 : index
    %28 = vector.load %arg10[%c0_24, %c0_25] : memref<8x128xf32, #tpu.memory_space<vmem>>, vector<8x128xf32>
    tpu.vector_store %arg10[%c0_24, %c0_25], %27 {strides = array<i32>} : memref<8x128xf32, #tpu.memory_space<vmem>>, vector<8x128xf32>,
    return
  }
  func.func @transform_0(%arg0: i32) -> (i32, i32) {
    %c0_i32 = arith.constant 0 : i32
    %c0_i32_0 = arith.constant 0 : i32
    return %arg0, %c0_i32 : i32, i32
  }
  func.func @transform_1(%arg0: i32) -> (i32, i32) {
    %c0_i32 = arith.constant 0 : i32
    %c0_i32_0 = arith.constant 0 : i32
    return %arg0, %c0_i32 : i32, i32
  }
  func.func @transform_2(%arg0: i32) -> (i32, i32) {
    %c0_i32 = arith.constant 0 : i32
    %c0_i32_0 = arith.constant 0 : i32
    %c0_i32_1 = arith.constant 0 : i32
    return %c0_i32, %c0_i32_0 : i32, i32
  }
  func.func @transform_3(%arg0: i32) -> (i32, i32) {
    %c0_i32 = arith.constant 0 : i32
    %c0_i32_0 = arith.constant 0 : i32
    %c0_i32_1 = arith.constant 0 : i32
    return %c0_i32, %c0_i32_0 : i32, i32
  }
  func.func @transform_4(%arg0: i32) -> (i32, i32) {
    %c0_i32 = arith.constant 0 : i32
    %c0_i32_0 = arith.constant 0 : i32
    %c0_i32_1 = arith.constant 0 : i32
    return %c0_i32, %c0_i32_0 : i32, i32
  }
  func.func @transform_5(%arg0: i32) -> (i32, i32, i32) {
    %c0_i32 = arith.constant 0 : i32
    %c0_i32_0 = arith.constant 0 : i32
    %c0_i32_1 = arith.constant 0 : i32
    %c0_i32_2 = arith.constant 0 : i32
    return %c0_i32, %c0_i32_0, %c0_i32_1 : i32, i32, i32
  }
  func.func @transform_6(%arg0: i32) -> (i32, i32, i32) {
    %c0_i32 = arith.constant 0 : i32
    %c0_i32_0 = arith.constant 0 : i32
    %c0_i32_1 = arith.constant 0 : i32
    %c0_i32_2 = arith.constant 0 : i32
    return %c0_i32, %c0_i32_0, %c0_i32_1 : i32, i32, i32
  }
  func.func @transform_7(%arg0: i32) -> (i32, i32) {
    %c0_i32 = arith.constant 0 : i32
    %c0_i32_0 = arith.constant 0 : i32
    %c0_i32_1 = arith.constant 0 : i32
    return %c0_i32, %c0_i32_0 : i32, i32
  }
  func.func @transform_8(%arg0: i32) -> (i32, i32) {
    %c0_i32 = arith.constant 0 : i32
    %c0_i32_0 = arith.constant 0 : i32
    %c0_i32_1 = arith.constant 0 : i32
    return %c0_i32, %c0_i32_0 : i32, i32
  }
  func.func @transform_9(%arg0: i32) -> (i32, i32) {
    %c0_i32 = arith.constant 0 : i32
    %c0_i32_0 = arith.constant 0 : i32
    return %arg0, %c0_i32 : i32, i32
  }
}

</mosaic_0001>

<bundles_post_ra>
// kernel: _encoder_forward_impl.1
= control target key start
LH: loop header
LB: loop body
LE: loop exit
PB: predicated region body
PF: predicated region fallthrough
CT: control target
= control target key end

     0   :  { %14 = vsyncpa [#allocation3], 0  ;;  %s702_s0 = inlined_call_operand.vmem [shape: bf16[8,16], index: 0, kind: input, shape index: {}]   ;;  %s703_s1 = inlined_call_operand.vmem [shape: bf16[8,8], index: 1, kind: input, shape index: {}]   ;;  %s704_s2 = inlined_call_operand.vmem [shape: bf16[16,128], index: 2, kind: input, shape index: {}]   ;;  %s705_s3 = inlined_call_operand.vmem [shape: bf16[8,128], index: 3, kind: input, shape index: {}]   ;;  %s706_s4 = inlined_call_operand.vmem [shape: f32[1,128], index: 4, kind: input, shape index: {}]   ;;  %s707_s5 = inlined_call_operand.hbm [shape: bf16[1,128,128], index: 5, kind: input, shape index: {}]   ;;  %s708_s6 = inlined_call_operand.vmem [shape: f32[1,1,128], index: 6, kind: input, shape index: {}]   ;;  %s709_s7 = inlined_call_operand.hbm [shape: bf16[128,128], index: 7, kind: input, shape index: {}]   ;;  %s710_s8 = inlined_call_operand.vmem [shape: f32[1,128], index: 8, kind: input, shape index: {}]   ;;  %s711_s9 = inlined_call_operand.vmem [shape: f32[8,128], index: 9, kind: output, shape index: {}]  }
   0x1   :  { %15 = vsyncpa [#allocation5], 0  ;;  %s572_s30 = smov [#allocation2]   ;;  %s524_s13 = scalar_lea.hbm %s707_s5, 1024 }
   0x2   :  { %s31_s10 = sshll.u32 %s572_s30, 4  ;;  %p525_p0 = scmp.ne.s32.totalorder %s707_s5, %s524_s13  ;;  %s32_s10 = int_to_ptr.vmem [resolvable:$true] %s31_s10 }
   0x3   :  { %p528_p1 = scmp.lt.u32.totalorder %s524_s13, %s707_s5 }
   0x5   :  { %p530_p2 = pnand %p528_p1, %p525_p0 }
   0x7   :  { %533 = shalt.err (!%p530_p2)
}
   0x8   :  { %s534_s18 = scalar_lea.vmem %s32_s10, 1024  ;;  %p539_p4 = scmp.lt.s32.totalorder %s32_s10, %s32_s10 }
   0x9   :  { %p535_p3 = scmp.ne.s32.totalorder %s32_s10, %s534_s18  ;;  %p540_p5 = scmp.lt.s32.totalorder %s534_s18, %s534_s18 }
   0xb   :  { %p541_p6 = por %p540_p5, %p539_p4 }
   0xd   :  { %p542_p7 = pnand %p541_p6, %p535_p3 }
   0xf   :  { %545 = shalt.err (!%p542_p7)
}
  0x10   :  { %s573_s19 = smov 64   ;;  %s574_s20 = smov 4  }
  0x11   :  { %37 = dma.hbm_to_vmem [thread:$0]  %s707_s5, 1024, %s32_s10, [#allocation3], %s573_s19, %s573_s19, %s574_s20  }
  0x12   :  { %s575_s23 = smov [#allocation4]   ;;  %s546_s27 = scalar_lea.hbm %s709_s7, 1024 }
  0x13   :  { %s45_s24 = sshll.u32 %s575_s23, 4  ;;  %p547_p8 = scmp.ne.s32.totalorder %s709_s7, %s546_s27  ;;  %s46_s24 = int_to_ptr.vmem [resolvable:$true] %s45_s24 }
  0x14   :  { %p550_p9 = scmp.lt.u32.totalorder %s546_s27, %s709_s7 }
  0x16   :  { %p552_p10 = pnand %p550_p9, %p547_p8 }
  0x18   :  { %555 = shalt.err (!%p552_p10)
}
  0x19   :  { %s556_s12 = scalar_lea.vmem %s46_s24, 1024  ;;  %p561_p12 = scmp.lt.s32.totalorder %s46_s24, %s46_s24 }
  0x1a   :  { %p557_p11 = scmp.ne.s32.totalorder %s46_s24, %s556_s12  ;;  %p562_p13 = scmp.lt.s32.totalorder %s556_s12, %s556_s12 }
  0x1c   :  { %p563_p0 = por %p562_p13, %p561_p12 }
  0x1e   :  { %p564_p1 = pnand %p563_p0, %p557_p11 }
  0x20   :  { %567 = shalt.err (!%p564_p1)
}
  0x21   :  { %51 = dma.hbm_to_vmem [thread:$0]  %s709_s7, 1024, %s46_s24, [#allocation5], %s573_s19, %s573_s19, %s574_s20  }
  0x22   :  { %568 = dma.done.wait [#allocation3], 1024  }
  0x23   :  { %569 = vsyncadd [#allocation3], 4294966272 }
  0x24   :  { %570 = dma.done.wait [#allocation5], 1024  }
  0x25   :  { %571 = vsyncadd [#allocation5], 4294966272  ;;  %v576_v0 = vmov 0.0   ;;  %vm577_vm0 = vmmov 0   ;;  %vm70_vm1 = vcmask 1043456   ;;  %v507_v3 = vld [vmem:[%s704_s2] sm:$0xff]  }
  0x26   :  { %449 = vmatprep.subr.bf16.mxu0 %v576_v0  ;;  %455 = vmatprep.subr.bf16.mxu1 %v576_v0  ;;  %v65_v1 = vld [vmem:[%s705_s3] sm:$0xf]  ;;  %vm66_vm2 = vcmask 64512   ;;  %vm120_vm3 = vcmask 130048   ;;  %v509_v7 = vld [vmem:[#allocation2 + $0x8] sm:$0xff]   ;;  %v510_v8 = vld [vmem:[#allocation2 + $0x10] sm:$0xff]  }
  0x27   :  { %451 = vmatprep.mubr.msk.bf16.mxu0 %vm577_vm0, %v576_v0  ;;  %457 = vmatprep.mubr.msk.bf16.mxu1 %vm577_vm0, %v576_v0  ;;  %v72_v2 = vsel %vm70_vm1, %v65_v1, 0  ;;  %v64_v4 = vld [vmem:[%s703_s1] sm:$0xf]  ;;  %v511_v9 = vld [vmem:[#allocation2 + $0x18] sm:$0xff]   ;;  %v513_v11 = vld [vmem:[#allocation2 + $0x28] sm:$0xff]  }
  0x28   :  { %450 = vmatpush3.bf16.msra.mxu0 %v72_v2  ;;  %v508_v5 = vld [vmem:[#allocation2] sm:$0xff]   ;;  %456 = vmatpush3.bf16.msra.mxu1 %v507_v3  ;;  %v514_v12 = vld [vmem:[#allocation2 + $0x30] sm:$0xff]   ;;  %v515_v13 = vld [vmem:[#allocation2 + $0x38] sm:$0xff]  }
  0x29   :  { %v61_v6 = vld [vmem:[%s702_s0] sm:$0xf]  ;;  %461 = vmatprep.subr.bf16.mxu0 %v576_v0  ;;  %481 = vmatprep.subr.bf16.mxu1 %v576_v0  ;;  %v517_v15 = vld [vmem:[#allocation4 + $0x8] sm:$0xff]   ;;  %v518_v16 = vld [vmem:[#allocation4 + $0x10] sm:$0xff]  }
  0x2a   :  { %v512_v10 = vld [vmem:[#allocation2 + $0x20] sm:$0xff]   ;;  %v519_v17 = vld [vmem:[#allocation4 + $0x18] sm:$0xff]   ;;  %v521_v19 = vld [vmem:[#allocation4 + $0x28] sm:$0xff]  }
  0x2b   :  { %452 = vmatmul.mubr.msk.bf16.vlgmr.msra.gmra.mrb[0].mxu0 %vm66_vm2, %v64_v4  ;;  %458 = vmatmul.mubr.msk.bf16.vlgmr.msra.gmra.mrb[0].mxu1 %vm120_vm3, %v61_v6  ;;  %v516_v14 = vld [vmem:[#allocation4] sm:$0xff]   ;;  %v522_v33 = vld [vmem:[#allocation4 + $0x30] sm:$0xff]   ;;  %v523_v34 = vld [vmem:[#allocation4 + $0x38] sm:$0xff]  }
  0x2c   :  { %462 = vmatpush3.bf16.msra.mxu0 %v508_v5  ;;  %477 = vmatprep.mubr.msk.bf16.mxu0 %vm577_vm0, %v576_v0  ;;  %v520_v18 = vld [vmem:[#allocation4 + $0x20] sm:$0xff]  }
  0x2d   :  { %463 = vmatprep.subr.bf16.mxu0 %v576_v0  ;;  %497 = vmatprep.mubr.msk.bf16.mxu1 %vm577_vm0, %v576_v0  ;;  %v408_v23 = vld [vmem:[%s706_s4] ss:$0 sm:$0xff] }
  0x2e   :  { %482 = vmatpush3.bf16.msra.mxu1 %v516_v14  ;;  %v409_v35 = vld [vmem:[%s708_s6] ss:$0 sm:$0xff] }
  0x2f   :  { %483 = vmatprep.subr.bf16.mxu1 %v576_v0  ;;  %v418_v43 = vld [vmem:[%s710_s8] ss:$0 sm:$0xff] }
  0x30   :  { %464 = vmatpush3.bf16.msra.mxu0 %v509_v7 }
  0x31   :  { %465 = vmatprep.subr.bf16.mxu0 %v576_v0 }
  0x32   :  { %484 = vmatpush3.bf16.msra.mxu1 %v517_v15 }
  0x33   :  { %485 = vmatprep.subr.bf16.mxu1 %v576_v0 }
  0x34   :  { %466 = vmatpush3.bf16.msra.mxu0 %v510_v8 }
  0x35   :  { %467 = vmatprep.subr.bf16.mxu0 %v576_v0 }
  0x36   :  { %486 = vmatpush3.bf16.msra.mxu1 %v518_v16 }
  0x37   :  { %487 = vmatprep.subr.bf16.mxu1 %v576_v0 }
  0x38   :  { %468 = vmatpush3.bf16.msra.mxu0 %v511_v9 }
  0x39   :  { %469 = vmatprep.subr.bf16.mxu0 %v576_v0 }
  0x3a   :  { %488 = vmatpush3.bf16.msra.mxu1 %v519_v17 }
  0x3b   :  { %489 = vmatprep.subr.bf16.mxu1 %v576_v0 }
  0x3c   :  { %470 = vmatpush3.bf16.msra.mxu0 %v512_v10 }
  0x3d   :  { %471 = vmatprep.subr.bf16.mxu0 %v576_v0 }
  0x3e   :  { %490 = vmatpush3.bf16.msra.mxu1 %v520_v18 }
  0x3f   :  { %491 = vmatprep.subr.bf16.mxu1 %v576_v0 }
  0x40   :  { %472 = vmatpush3.bf16.msra.mxu0 %v513_v11 }
  0x41   :  { %473 = vmatprep.subr.bf16.mxu0 %v576_v0 }
  0x42   :  { %492 = vmatpush3.bf16.msra.mxu1 %v521_v19 }
  0x43   :  { %493 = vmatprep.subr.bf16.mxu1 %v576_v0 }
  0x44   :  { %474 = vmatpush3.bf16.msra.mxu0 %v514_v12 }
  0x45   :  { %475 = vmatprep.subr.bf16.mxu0 %v576_v0 }
  0x46   :  { %494 = vmatpush3.bf16.msra.mxu1 %v522_v33 }
  0x47   :  { %495 = vmatprep.subr.bf16.mxu1 %v576_v0 }
  0x48   :  { %476 = vmatpush3.bf16.msra.mxu0 %v515_v13 }
  0x4a   :  { %496 = vmatpush3.bf16.msra.mxu1 %v523_v34 }
  0xfe   :  { %v108_v20 = vpop.f32.mrb[0].mxu0  ;;  %v158_v22 = vpop.f32.mrb[0].mxu1 }
  0xff   :  { %v453_v21 = vpop.f32.mrb[1].mxu0  ;;  %v159_v24 = vadd.f32 %v158_v22, %v108_v20  ;;  %v459_v26 = vpop.f32.mrb[1].mxu1 }
 0x100   :  { %v111_v25 = vpop.f32.mrb[2].mxu0  ;;  %v161_v28 = vpop.f32.mrb[2].mxu1 }
 0x101   :  { %v454_v27 = vpop.f32.mrb[3].mxu0  ;;  %v171_v29 = vadd.f32 %v408_v23, %v159_v24  ;;  %v460_v30 = vpop.f32.mrb[3].mxu1 }
 0x103   :  { %v172_v31 = vmax.f32 %v171_v29, 0.0 }
 0x105   :  { %v173_v32 = vpack.c.bf16 %v172_v31, %v172_v31 }
 0x107   :  { %478 = vmatmul.mubr.bf16.vlgmr.msra.gmra.mrb[4].mxu0 %v173_v32 }
 0x1da   :  { %v279_v36 = vpop.f32.mrb[4].mxu0 }
 0x1db   :  { %v280_v37 = vadd.f32 %v409_v35, %v279_v36  ;;  %v479_v38 = vpop.f32.mrb[5].mxu0 }
 0x1dc   :  { %v282_v39 = vpop.f32.mrb[6].mxu0 }
 0x1dd   :  { %v285_v40 = vmax.f32 %v280_v37, 0.0  ;;  %v480_v41 = vpop.f32.mrb[7].mxu0 }
 0x1df   :  { %v286_v42 = vpack.c.bf16 %v285_v40, %v285_v40 }
 0x1e1   :  { %498 = vmatmul.mubr.bf16.vlgmr.msra.gmra.mrb[4].mxu1 %v286_v42 }
 0x2b4   :  { %v392_v44 = vpop.f32.mrb[4].mxu1 }
 0x2b5   :  { %v393_v45 = vadd.f32 %v418_v43, %v392_v44  ;;  %v499_v46 = vpop.f32.mrb[5].mxu1 }
 0x2b6   :  { %v395_v47 = vpop.f32.mrb[6].mxu1 }
 0x2b7   :  { %398 = vst [vmem:[%s711_s9] sm:$0xff] %v393_v45  ;;  %v500_v48 = vpop.f32.mrb[7].mxu1 }
 0x2b8   :  { %403 = vsyncpa [#allocation3], 1 }
 0x2b9   :  { %404 = vsyncpa [#allocation5], 1 }

</bundles_post_ra>
